<compile_context>
chip_gen: v7x
topology: tpu7x:2x2x1
jax: 0.10.0
libtpu: 0.0.40
codegen_flags: <defaults>
</compile_context>

<pallas_src>
import functools
import math

import jax
import jax.numpy as jnp
from jax.experimental import pallas as pl
from jax.experimental.pallas import tpu as pltpu  # noqa: F401  (TPU backend assumed)

# ---- small config consistent with the module's __init__ ----
HIDDEN = 32          # config.hidden_size
NUM_HEADS = 4        # config.num_attention_heads
HEAD_DIM = 8         # config.head_dim  (NUM_HEADS*HEAD_DIM == HIDDEN, required by context.view)
KV_C = 16            # config.kv_compressed_dim
Q_C = 16             # config.query_compressed_dim
ROPE = 4             # config.rope_dim_per_head (0 < ROPE < HEAD_DIM -> W_QR/W_KR branch)
ROPE_HALF = ROPE // 2
BATCH = 2
SEQ = 8

HD = NUM_HEADS * HEAD_DIM            # 32
OUT_W = 128                          # lane-dense output slab width: [out | k | v | pad]
PAD_W = OUT_W - (HIDDEN + 2 * HD)    # 32


def precompute_cos_sin(dim, end, theta=10000.0):
    """JAX port of precompute_freqs_cis: cos/sin of shape [end, dim//2]."""
    freqs = 1.0 / theta ** (jnp.arange(0, dim, 2)[: dim // 2].astype(jnp.float32) / dim)
    t = jnp.arange(end, dtype=jnp.float32)
    freqs = jnp.outer(t, freqs)
    return jnp.cos(freqs), jnp.sin(freqs)


# ----------------------------------------------------------------------------
# Kernel: single invocation, everything resident in VMEM.
# ----------------------------------------------------------------------------
def mla_kernel(x_ref, cos_ref, sin_ref, keep_ref, mask_ref,
               wkvd_ref, bkvd_ref, wkva_ref, bkva_ref,
               wqa_ref, bqa_ref, wo_ref, bo_ref,
               o_ref):
    f32 = jnp.float32
    dot = functools.partial(jnp.dot, preferred_element_type=f32)

    x = x_ref[...]                                        # [N, HIDDEN]  (N = B*S)
    n = x.shape[0]

    # ---- fused projections (folded weights; one wide MXU push each) ----
    c_kv = dot(x, wkvd_ref[...]) + bkvd_ref[...]          # [N, KV_C]
    kv_all = dot(c_kv, wkva_ref[...]) + bkva_ref[...]     # [N, 4*HD] = [k | v | k_r | k_r_shift]
    q_all = dot(x, wqa_ref[...]) + bqa_ref[...]           # [N, 3*HD] = [q | q_r | q_r_shift]

    k = kv_all[:, 0 * HD:1 * HD]
    v = kv_all[:, 1 * HD:2 * HD]
    kr = kv_all[:, 2 * HD:3 * HD]
    krs = kv_all[:, 3 * HD:4 * HD]
    q = q_all[:, 0 * HD:1 * HD]
    qr = q_all[:, 1 * HD:2 * HD]
    qrs = q_all[:, 2 * HD:3 * HD]

    # ---- decoupled RoPE for all heads at once ----
    # cosD/sinD are zero outside the first ROPE_HALF lanes of each head block,
    # so (qr*cos - qrs*sin) already matches the torch zero-padded rotation, and
    # `keep` re-injects the untouched lanes (>= ROPE within each head block).
    cosD = cos_ref[...]                                   # [N, HD]
    sinD = sin_ref[...]
    keep = keep_ref[...]                                  # [1, HD]
    q = qr * cosD - qrs * sinD + q * keep
    k = kr * cosD - krs * sinD + k * keep

    # ---- attention, all heads batched; block-diagonal batch mask ----
    q3 = q.reshape(n, NUM_HEADS, HEAD_DIM)
    k3 = k.reshape(n, NUM_HEADS, HEAD_DIM)
    v3 = v.reshape(n, NUM_HEADS, HEAD_DIM)
    s = jnp.einsum('qhd,khd->hqk', q3, k3,
                   preferred_element_type=f32)            # [H, N, N] (1/sqrt(D) folded into Wq)
    s = s + mask_ref[...]                                 # [N, N] broadcast over heads
    m = jnp.max(s, axis=-1, keepdims=True)
    p = jnp.exp(s - m)
    denom = jnp.sum(p, axis=-1, keepdims=True)
    probs = p * pl.reciprocal(denom, approx=True)
    ctx = jnp.einsum('hqk,khd->qhd', probs, v3,
                     preferred_element_type=f32)          # [N, H, D]
    ctx = ctx.reshape(n, HD)

    out = dot(ctx, wo_ref[...]) + bo_ref[...]             # [N, HIDDEN]

    # ---- single lane-dense (128-wide) store: [out | rotated-k | v | zero pad] ----
    pad = jnp.zeros((n, PAD_W), f32)
    o_ref[...] = jnp.concatenate([out, k, v, pad], axis=-1)


# ----------------------------------------------------------------------------
# Host-side parameter folding and table construction.
# ----------------------------------------------------------------------------
def fold_params(params):
    scale = 1.0 / math.sqrt(HEAD_DIM)

    # Q: down+up projections folded, attention scale folded in.
    w_q = (params["wdq_t"] @ params["wuq_t"]) * scale                     # [HIDDEN, HD]
    b_q = (params["bdq"] @ params["wuq_t"] + params["buq"]) * scale       # [1, HD]

    # Block-diagonal decoupled-RoPE weights (and the rotate_half-shifted copy).
    def rope_blockdiag(w_rope_t):  # [HEAD_DIM, ROPE]
        w = jnp.zeros((HD, HD), jnp.float32)
        ws = jnp.zeros((HD, HD), jnp.float32)
        for h in range(NUM_HEADS):
            r0 = h * HEAD_DIM
            w = w.at[r0:r0 + HEAD_DIM, r0:r0 + ROPE].set(w_rope_t)
            # shifted copy: column j holds original column j+ROPE_HALF (j < ROPE_HALF);
            # the rest stays zero (it is multiplied by a zero sin lane anyway).
            ws = ws.at[r0:r0 + HEAD_DIM, r0:r0 + ROPE_HALF].set(w_rope_t[:, ROPE_HALF:])
        return w, ws

    wqr_bd, wqr_bds = rope_blockdiag(params["wqr_t"])
    wkr_bd, wkr_bds = rope_blockdiag(params["wkr_t"])

    # q_all = x @ w_q_all + b_q_all -> [q | q_rope | q_rope_shifted]
    w_q_all = jnp.concatenate([w_q, w_q @ wqr_bd, w_q @ wqr_bds], axis=1)   # [HIDDEN, 3*HD]
    b_q_all = jnp.concatenate([b_q, b_q @ wqr_bd, b_q @ wqr_bds], axis=1)   # [1, 3*HD]

    # kv_all = c_kv @ w_kv_all + b_kv_all -> [k | v | k_rope | k_rope_shifted]
    wuk_t, buk = params["wuk_t"], params["buk"]
    wuv_t, buv = params["wuv_t"], params["buv"]
    w_kv_all = jnp.concatenate([wuk_t, wuv_t, wuk_t @ wkr_bd, wuk_t @ wkr_bds], axis=1)  # [KV_C, 4*HD]
    b_kv_all = jnp.concatenate([buk, buv, buk @ wkr_bd, buk @ wkr_bds], axis=1)          # [1, 4*HD]

    return dict(
        w_kv_dn=params["wdkv_t"], b_kv_dn=params["bdkv"],
        w_kv_all=w_kv_all, b_kv_all=b_kv_all,
        w_q_all=w_q_all, b_q_all=b_q_all,
        w_o=params["wo_t"], b_o=params["bo"],
    )


def build_tables(cos, sin, B, S):
    """Per-row (flattened B*S) zero-padded cos/sin, keep mask, batch mask."""
    pad = jnp.zeros((S, HEAD_DIM - ROPE_HALF), jnp.float32)
    cos_h = jnp.concatenate([cos, pad], axis=-1)          # [S, HEAD_DIM]
    sin_h = jnp.concatenate([sin, pad], axis=-1)
    cosD = jnp.tile(cos_h, (B, NUM_HEADS))                # [B*S, HD]
    sinD = jnp.tile(sin_h, (B, NUM_HEADS))

    keep = (jnp.arange(HD) % HEAD_DIM >= ROPE).astype(jnp.float32)[None, :]   # [1, HD]

    bid = jnp.repeat(jnp.arange(B), S)                    # [B*S]
    same = bid[:, None] == bid[None, :]
    batch_mask = jnp.where(same, 0.0, -1e30).astype(jnp.float32)              # [B*S, B*S]
    return cosD, sinD, keep, batch_mask


def mla_forward(hidden, cos, sin, params):
    B, S, _ = hidden.shape
    N = B * S
    fold = fold_params(params)
    cosD, sinD, keep, batch_mask = build_tables(cos, sin, B, S)
    x_flat = hidden.reshape(N, HIDDEN)

    # Single grid step (no grid): whole-array VMEM residency, no per-step
    # pipeline overhead, one lane-dense output slab.
    slab = pl.pallas_call(
        mla_kernel,
        out_shape=jax.ShapeDtypeStruct((N, OUT_W), jnp.float32),
    )(x_flat, cosD, sinD, keep, batch_mask,
      fold["w_kv_dn"], fold["b_kv_dn"], fold["w_kv_all"], fold["b_kv_all"],
      fold["w_q_all"], fold["b_q_all"], fold["w_o"], fold["b_o"])

    out = slab[:, :HIDDEN].reshape(B, S, HIDDEN)
    k_cache = slab[:, HIDDEN:HIDDEN + HD].reshape(B, S, NUM_HEADS, HEAD_DIM)
    v_cache = slab[:, HIDDEN + HD:HIDDEN + 2 * HD].reshape(B, S, NUM_HEADS, HEAD_DIM)
    # present KV cache exactly like torch: (k_r, v) with shape [B, S, H, D]
    return out, (k_cache, v_cache)


# ----------------------------------------------------------------------------
# Init + plain-JAX reference (mirror of the torch forward) for correctness.
# ----------------------------------------------------------------------------
def init_params(key):
    """Deterministic nn.Linear-style init (uniform +-1/sqrt(fan_in))."""
    def linear(k, fan_in, fan_out, bias=True):
        kw, kb = jax.random.split(k)
        bound = 1.0 / math.sqrt(fan_in)
        w = jax.random.uniform(kw, (fan_out, fan_in), jnp.float32, -bound, bound)
        b = jax.random.uniform(kb, (fan_out,), jnp.float32, -bound, bound) if bias else None
        return w, b

    keys = jax.random.split(key, 8)
    wdkv, bdkv = linear(keys[0], HIDDEN, KV_C)
    wuk, buk = linear(keys[1], KV_C, HD)
    wuv, buv = linear(keys[2], KV_C, HD)
    wdq, bdq = linear(keys[3], HIDDEN, Q_C)
    wuq, buq = linear(keys[4], Q_C, HD)
    wqr, _ = linear(keys[5], HEAD_DIM, ROPE, bias=False)
    wkr, _ = linear(keys[6], HEAD_DIM, ROPE, bias=False)
    wo, bo = linear(keys[7], HD, HIDDEN)

    # pass weights pre-transposed ([in, out]) so everything is x @ W (no transposes)
    return dict(
        wdkv_t=wdkv.T, bdkv=bdkv[None, :],
        wuk_t=wuk.T, buk=buk[None, :],
        wuv_t=wuv.T, buv=buv[None, :],
        wdq_t=wdq.T, bdq=bdq[None, :],
        wuq_t=wuq.T, buq=buq[None, :],
        wqr_t=wqr.T, wkr_t=wkr.T,
        wo_t=wo.T, bo=bo[None, :],
    )


def mla_reference(hidden, cos, sin, params):
    """Plain-JAX mirror of the torch forward (for correctness check)."""
    B, S, _ = hidden.shape
    c_kv = hidden @ params["wdkv_t"] + params["bdkv"]
    k = c_kv @ params["wuk_t"] + params["buk"]
    v = c_kv @ params["wuv_t"] + params["buv"]
    q = (hidden @ params["wdq_t"] + params["bdq"]) @ params["wuq_t"] + params["buq"]
    q = q.reshape(B, S, NUM_HEADS, HEAD_DIM)
    k = k.reshape(B, S, NUM_HEADS, HEAD_DIM)
    v = v.reshape(B, S, NUM_HEADS, HEAD_DIM)

    q_r = q @ params["wqr_t"]                             # [B,S,H,ROPE]
    k_r = k @ params["wkr_t"]
    cos_b = cos[None, :, None, :]
    sin_b = sin[None, :, None, :]
    q_rot = jnp.concatenate(
        [q_r[..., :ROPE_HALF] * cos_b - q_r[..., ROPE_HALF:] * sin_b,
         jnp.zeros_like(q_r[..., ROPE_HALF:])], axis=-1)
    k_rot = jnp.concatenate(
        [k_r[..., :ROPE_HALF] * cos_b - k_r[..., ROPE_HALF:] * sin_b,
         jnp.zeros_like(k_r[..., ROPE_HALF:])], axis=-1)
    q = jnp.concatenate([q_rot, q[..., ROPE:]], axis=-1)
    k = jnp.concatenate([k_rot, k[..., ROPE:]], axis=-1)

    qh, kh, vh = (t.transpose(0, 2, 1, 3) for t in (q, k, v))
    scores = jnp.einsum("bhqd,bhkd->bhqk", qh, kh) / math.sqrt(HEAD_DIM)
    probs = jax.nn.softmax(scores, axis=-1)
    ctx = jnp.einsum("bhqk,bhkd->bhqd", probs, vh)
    ctx = ctx.transpose(0, 2, 1, 3).reshape(B, S, HIDDEN)
    out = ctx @ params["wo_t"] + params["bo"]
    return out, (k, v)


if __name__ == "__main__":
    key = jax.random.PRNGKey(0)
    k_params, k_x = jax.random.split(key)
    params = init_params(k_params)
    hidden = jax.random.normal(k_x, (BATCH, SEQ, HIDDEN), dtype=jnp.float32)

    # position_ids default to arange(SEQ); max_seq_length*2 table, take first SEQ rows.
    cos_full, sin_full = precompute_cos_sin(ROPE, 2 * SEQ)
    cos, sin = cos_full[:SEQ], sin_full[:SEQ]             # [SEQ, ROPE//2]

    out, (k_cache, v_cache) = mla_forward(hidden, cos, sin, params)
    jax.block_until_ready(out)

    ref_out, (ref_k, ref_v) = mla_reference(hidden, cos, sin, params)
    assert jnp.allclose(out, ref_out, rtol=2e-2, atol=2e-2)
    assert jnp.allclose(k_cache, ref_k, rtol=2e-2, atol=2e-2)
    assert jnp.allclose(v_cache, ref_v, rtol=2e-2, atol=2e-2)

    # TODO(synk): attention_mask / token_temperatures / past_key_value paths and
    # attention dropout (p=0 here) are not exercised in this synthetic kernel.
    print("KERNEL_OK")
</pallas_src>

<mosaic_0001>
module attributes {stable_mosaic.version = 11 : i64} {
  func.func @mla_kernel(%arg0: memref<16x32xf32, #tpu.memory_space<vmem>>, %arg1: memref<16x32xf32, #tpu.memory_space<vmem>>, %arg2: memref<16x32xf32, #tpu.memory_space<vmem>>, %arg3: memref<1x32xf32, #tpu.memory_space<vmem>>, %arg4: memref<16x16xf32, #tpu.memory_space<vmem>>, %arg5: memref<32x16xf32, #tpu.memory_space<vmem>>, %arg6: memref<1x16xf32, #tpu.memory_space<vmem>>, %arg7: memref<16x128xf32, #tpu.memory_space<vmem>>, %arg8: memref<1x128xf32, #tpu.memory_space<vmem>>, %arg9: memref<32x96xf32, #tpu.memory_space<vmem>>, %arg10: memref<1x96xf32, #tpu.memory_space<vmem>>, %arg11: memref<32x32xf32, #tpu.memory_space<vmem>>, %arg12: memref<1x32xf32, #tpu.memory_space<vmem>>, %arg13: memref<16x128xf32, #tpu.memory_space<vmem>>) attributes {dimension_semantics = [], scalar_prefetch = 0 : i64, scratch_operands = 0 : i64, tpu.core_type = #tpu.core_type<tc>} {
    %c0 = arith.constant 0 : index
    %c0_0 = arith.constant 0 : index
    %0 = vector.load %arg0[%c0, %c0_0] : memref<16x32xf32, #tpu.memory_space<vmem>>, vector<16x32xf32>
    %c0_1 = arith.constant 0 : index
    %c0_2 = arith.constant 0 : index
    %1 = vector.load %arg5[%c0_1, %c0_2] : memref<32x16xf32, #tpu.memory_space<vmem>>, vector<32x16xf32>
    %cst = arith.constant dense<0.000000e+00> : vector<16x16xf32>
    %2 = tpu.matmul %0, %1, %cst {dimension_numbers = #tpu.dot_dimension_numbers<[1], [0], [0], [1], [0, 0, 1, 1], [], []>} : vector<16x32xf32>, vector<32x16xf32>, vector<16x16xf32> -> vector<16x16xf32>
    %c0_3 = arith.constant 0 : index
    %c0_4 = arith.constant 0 : index
    %3 = vector.load %arg6[%c0_3, %c0_4] : memref<1x16xf32, #tpu.memory_space<vmem>>, vector<1x16xf32>
    %4 = vector.broadcast %3 : vector<1x16xf32> to vector<16x16xf32>
    %5 = arith.addf %2, %4 : vector<16x16xf32>
    %c0_5 = arith.constant 0 : index
    %c0_6 = arith.constant 0 : index
    %6 = vector.load %arg7[%c0_5, %c0_6] : memref<16x128xf32, #tpu.memory_space<vmem>>, vector<16x128xf32>
    %cst_7 = arith.constant dense<0.000000e+00> : vector<16x128xf32>
    %7 = tpu.matmul %5, %6, %cst_7 {dimension_numbers = #tpu.dot_dimension_numbers<[1], [0], [0], [1], [0, 0, 1, 1], [], []>} : vector<16x16xf32>, vector<16x128xf32>, vector<16x128xf32> -> vector<16x128xf32>
    %c0_8 = arith.constant 0 : index
    %c0_9 = arith.constant 0 : index
    %8 = vector.load %arg8[%c0_8, %c0_9] : memref<1x128xf32, #tpu.memory_space<vmem>>, vector<1x128xf32>
    %9 = vector.broadcast %8 : vector<1x128xf32> to vector<16x128xf32>
    %10 = arith.addf %7, %9 : vector<16x128xf32>
    %c0_10 = arith.constant 0 : index
    %c0_11 = arith.constant 0 : index
    %11 = vector.load %arg9[%c0_10, %c0_11] : memref<32x96xf32, #tpu.memory_space<vmem>>, vector<32x96xf32>
    %cst_12 = arith.constant dense<0.000000e+00> : vector<16x96xf32>
    %12 = tpu.matmul %0, %11, %cst_12 {dimension_numbers = #tpu.dot_dimension_numbers<[1], [0], [0], [1], [0, 0, 1, 1], [], []>} : vector<16x32xf32>, vector<32x96xf32>, vector<16x96xf32> -> vector<16x96xf32>
    %c0_13 = arith.constant 0 : index
    %c0_14 = arith.constant 0 : index
    %13 = vector.load %arg10[%c0_13, %c0_14] : memref<1x96xf32, #tpu.memory_space<vmem>>, vector<1x96xf32>
    %14 = vector.broadcast %13 : vector<1x96xf32> to vector<16x96xf32>
    %15 = arith.addf %12, %14 : vector<16x96xf32>
    %16 = vector.extract_strided_slice %10 {offsets = [0, 0], sizes = [16, 32], strides = [1, 1]} : vector<16x128xf32> to vector<16x32xf32>
    %17 = vector.extract_strided_slice %10 {offsets = [0, 32], sizes = [16, 32], strides = [1, 1]} : vector<16x128xf32> to vector<16x32xf32>
    %18 = vector.extract_strided_slice %10 {offsets = [0, 64], sizes = [16, 32], strides = [1, 1]} : vector<16x128xf32> to vector<16x32xf32>
    %19 = vector.extract_strided_slice %10 {offsets = [0, 96], sizes = [16, 32], strides = [1, 1]} : vector<16x128xf32> to vector<16x32xf32>
    %20 = vector.extract_strided_slice %15 {offsets = [0, 0], sizes = [16, 32], strides = [1, 1]} : vector<16x96xf32> to vector<16x32xf32>
    %21 = vector.extract_strided_slice %15 {offsets = [0, 32], sizes = [16, 32], strides = [1, 1]} : vector<16x96xf32> to vector<16x32xf32>
    %22 = vector.extract_strided_slice %15 {offsets = [0, 64], sizes = [16, 32], strides = [1, 1]} : vector<16x96xf32> to vector<16x32xf32>
    %c0_15 = arith.constant 0 : index
    %c0_16 = arith.constant 0 : index
    %23 = vector.load %arg1[%c0_15, %c0_16] : memref<16x32xf32, #tpu.memory_space<vmem>>, vector<16x32xf32>
    %c0_17 = arith.constant 0 : index
    %c0_18 = arith.constant 0 : index
    %24 = vector.load %arg2[%c0_17, %c0_18] : memref<16x32xf32, #tpu.memory_space<vmem>>, vector<16x32xf32>
    %c0_19 = arith.constant 0 : index
    %c0_20 = arith.constant 0 : index
    %25 = vector.load %arg3[%c0_19, %c0_20] : memref<1x32xf32, #tpu.memory_space<vmem>>, vector<1x32xf32>
    %26 = arith.mulf %21, %23 : vector<16x32xf32>
    %27 = arith.mulf %22, %24 : vector<16x32xf32>
    %28 = arith.subf %26, %27 : vector<16x32xf32>
    %29 = vector.broadcast %25 : vector<1x32xf32> to vector<16x32xf32>
    %30 = arith.mulf %20, %29 : vector<16x32xf32>
    %31 = arith.addf %28, %30 : vector<16x32xf32>
    %32 = arith.mulf %18, %23 : vector<16x32xf32>
    %33 = arith.mulf %19, %24 : vector<16x32xf32>
    %34 = arith.subf %32, %33 : vector<16x32xf32>
    %35 = vector.broadcast %25 : vector<1x32xf32> to vector<16x32xf32>
    %36 = arith.mulf %16, %35 : vector<16x32xf32>
    %37 = arith.addf %34, %36 : vector<16x32xf32>
    %38 = vector.shape_cast %31 : vector<16x32xf32> to vector<16x4x8xf32>
    %39 = vector.shape_cast %37 : vector<16x32xf32> to vector<16x4x8xf32>
    %40 = vector.shape_cast %17 : vector<16x32xf32> to vector<16x4x8xf32>
    "tpu.trace_start"() <{level = 10 : i32, message = "qhd,khd->hqk"}> : () -> ()
    %cst_21 = arith.constant dense<0.000000e+00> : vector<4x16x16xf32>
    %41 = tpu.matmul %38, %39, %cst_21 {dimension_numbers = #tpu.dot_dimension_numbers<[2], [2], [0], [0], [0, 1, 0, 0, 1, 0], [1], [1]>} : vector<16x4x8xf32>, vector<16x4x8xf32>, vector<4x16x16xf32> -> vector<4x16x16xf32>
    "tpu.trace_stop"() : () -> ()
    %c0_22 = arith.constant 0 : index
    %c0_23 = arith.constant 0 : index
    %42 = vector.load %arg4[%c0_22, %c0_23] : memref<16x16xf32, #tpu.memory_space<vmem>>, vector<16x16xf32>
    %43 = vector.shape_cast %42 : vector<16x16xf32> to vector<1x16x16xf32>
    %44 = vector.broadcast %43 : vector<1x16x16xf32> to vector<4x16x16xf32>
    %45 = arith.addf %41, %44 : vector<4x16x16xf32>
    %cst_24 = arith.constant dense<0xFF800000> : vector<4x16xf32>
    %46 = vector.multi_reduction <maximumf>, %45, %cst_24 [2] : vector<4x16x16xf32> to vector<4x16xf32>
    %47 = vector.shape_cast %46 : vector<4x16xf32> to vector<4x16x1xf32>
    %48 = vector.broadcast %47 : vector<4x16x1xf32> to vector<4x16x16xf32>
    %49 = arith.subf %45, %48 : vector<4x16x16xf32>
    %50 = math.exp %49 : vector<4x16x16xf32>
    %cst_25 = arith.constant dense<0.000000e+00> : vector<4x16xf32>
    %51 = vector.multi_reduction <add>, %50, %cst_25 [2] : vector<4x16x16xf32> to vector<4x16xf32>
    %52 = vector.shape_cast %51 : vector<4x16xf32> to vector<4x16x1xf32>
    %53 = tpu.reciprocal %52 {approx = true} : vector<4x16x1xf32> -> vector<4x16x1xf32>
    %54 = vector.broadcast %53 : vector<4x16x1xf32> to vector<4x16x16xf32>
    %55 = arith.mulf %50, %54 : vector<4x16x16xf32>
    "tpu.trace_start"() <{level = 10 : i32, message = "hqk,khd->qhd"}> : () -> ()
    %cst_26 = arith.constant dense<0.000000e+00> : vector<4x8x16xf32>
    %56 = tpu.matmul %40, %55, %cst_26 {dimension_numbers = #tpu.dot_dimension_numbers<[0], [2], [2], [1], [0, 1, 0, 2, 1, 1], [1], [0]>} : vector<16x4x8xf32>, vector<4x16x16xf32>, vector<4x8x16xf32> -> vector<4x8x16xf32>
    %57 = tpu.transpose %56, [2, 0, 1] : vector<4x8x16xf32> -> vector<16x4x8xf32>
    "tpu.trace_stop"() : () -> ()
    %58 = vector.shape_cast %57 : vector<16x4x8xf32> to vector<16x32xf32>
    %c0_27 = arith.constant 0 : index
    %c0_28 = arith.constant 0 : index
    %59 = vector.load %arg11[%c0_27, %c0_28] : memref<32x32xf32, #tpu.memory_space<vmem>>, vector<32x32xf32>
    %cst_29 = arith.constant dense<0.000000e+00> : vector<16x32xf32>
    %60 = tpu.matmul %58, %59, %cst_29 {dimension_numbers = #tpu.dot_dimension_numbers<[1], [0], [0], [1], [0, 0, 1, 1], [], []>} : vector<16x32xf32>, vector<32x32xf32>, vector<16x32xf32> -> vector<16x32xf32>
    %c0_30 = arith.constant 0 : index
    %c0_31 = arith.constant 0 : index
    %61 = vector.load %arg12[%c0_30, %c0_31] : memref<1x32xf32, #tpu.memory_space<vmem>>, vector<1x32xf32>
    %62 = vector.broadcast %61 : vector<1x32xf32> to vector<16x32xf32>
    %63 = arith.addf %60, %62 : vector<16x32xf32>
    %cst_32 = arith.constant 0.000000e+00 : f32
    %64 = vector.broadcast %cst_32 : f32 to vector<16x32xf32>
    %65 = tpu.concatenate %63, %37, %17, %64 in 1 : vector<16x32xf32>, vector<16x32xf32>, vector<16x32xf32>, vector<16x32xf32> -> vector<16x128xf32>
    %c0_33 = arith.constant 0 : index
    %c0_34 = arith.constant 0 : index
    %66 = vector.load %arg13[%c0_33, %c0_34] : memref<16x128xf32, #tpu.memory_space<vmem>>, vector<16x128xf32>
    tpu.vector_store %arg13[%c0_33, %c0_34], %65 {strides = array<i32>} : memref<16x128xf32, #tpu.memory_space<vmem>>, vector<16x128xf32>,
    return
  }
}

</mosaic_0001>

<bundles_post_ra>
// kernel: tpu_custom_call.1
= control target key start
LH: loop header
LB: loop body
LE: loop exit
PB: predicated region body
PF: predicated region fallthrough
CT: control target
= control target key end

     0   :  { %18 = vsyncpa [#allocation3], 0  ;;  %s2987_s0 = inlined_call_operand.hbm [shape: f32[16,32], index: 0, kind: input, shape index: {}]   ;;  %s2988_s1 = inlined_call_operand.hbm [shape: f32[16,32], index: 1, kind: input, shape index: {}]   ;;  %s2989_s2 = inlined_call_operand.hbm [shape: f32[16,32], index: 2, kind: input, shape index: {}]   ;;  %s2990_s3 = inlined_call_operand.vmem [shape: f32[1,32], index: 3, kind: input, shape index: {}]   ;;  %s2991_s4 = inlined_call_operand.hbm [shape: f32[16,16], index: 4, kind: input, shape index: {}]   ;;  %s2992_s5 = inlined_call_operand.vmem [shape: f32[32,16], index: 5, kind: input, shape index: {}]   ;;  %s2993_s6 = inlined_call_operand.vmem [shape: f32[1,16], index: 6, kind: input, shape index: {}]   ;;  %s2994_s7 = inlined_call_operand.hbm [shape: f32[16,128], index: 7, kind: input, shape index: {}]   ;;  %s2995_s8 = inlined_call_operand.vmem [shape: f32[1,128], index: 8, kind: input, shape index: {}]   ;;  %s2996_s9 = inlined_call_operand.vmem [shape: f32[32,96], index: 9, kind: input, shape index: {}]   ;;  %s2997_s10 = inlined_call_operand.vmem [shape: f32[1,96], index: 10, kind: input, shape index: {}]   ;;  %s2998_s11 = inlined_call_operand.vmem [shape: f32[32,32], index: 11, kind: input, shape index: {}]   ;;  %s2999_s12 = inlined_call_operand.vmem [shape: f32[1,32], index: 12, kind: input, shape index: {}]   ;;  %s3000_s13 = inlined_call_operand.hbm [shape: f32[16,128], index: 13, kind: output, shape index: {}]  }
   0x1   :  { %19 = vsyncpa [#allocation6], 0 }
   0x2   :  { %20 = vsyncpa [#allocation9], 0 }
   0x3   :  { %21 = vsyncpa [#allocation4], 0  ;;  %s2533_s25 = smov [#allocation5]   ;;  %s2534_s27 = smov [#allocation8]  }
   0x4   :  { %s39_s26 = sshll.u32 %s2533_s25, 4  ;;  %s65_s28 = sshll.u32 %s2534_s27, 4  ;;  %s40_s26 = int_to_ptr.vmem [resolvable:$true] %s39_s26  ;;  %s2624_s28 = int_to_ptr.vmem [resolvable:$true] %s65_s28 }
   0x5   :  { %s2393_s14 = scalar_lea.hbm %s2988_s1, 256 }
   0x6   :  { %p2394_p0 = scmp.ne.s32.totalorder %s2988_s1, %s2393_s14  ;;  %p2397_p1 = scmp.lt.u32.totalorder %s2393_s14, %s2988_s1 }
   0x8   :  { %p2399_p2 = pnand %p2397_p1, %p2394_p0 }
   0xa   :  { %2402 = shalt.err (!%p2399_p2)
}
   0xb   :  { %s2403_s19 = scalar_lea.vmem %s40_s26, 256  ;;  %p2408_p4 = scmp.lt.s32.totalorder %s40_s26, %s40_s26 }
   0xc   :  { %p2404_p3 = scmp.ne.s32.totalorder %s40_s26, %s2403_s19  ;;  %p2409_p5 = scmp.lt.s32.totalorder %s2403_s19, %s2403_s19 }
   0xe   :  { %p2410_p6 = por %p2409_p5, %p2408_p4 }
  0x10   :  { %p2411_p7 = pnand %p2410_p6, %p2404_p3 }
  0x12   :  { %2414 = shalt.err (!%p2411_p7)
}
  0x13   :  { %s2535_s20 = smov 128   ;;  %s2536_s21 = smov 8  }
  0x14   :  { %45 = dma.hbm_to_vmem [thread:$0]  %s2988_s1, 256, %s40_s26, [#allocation6], %s2535_s20, %s2535_s20, %s2536_s21  }
  0x15   :  { %s2415_s27 = scalar_lea.hbm %s2991_s4, 256 }
  0x16   :  { %p2416_p8 = scmp.ne.s32.totalorder %s2991_s4, %s2415_s27  ;;  %p2419_p9 = scmp.lt.u32.totalorder %s2415_s27, %s2991_s4 }
  0x18   :  { %p2421_p10 = pnand %p2419_p9, %p2416_p8 }
  0x1a   :  { %2424 = shalt.err (!%p2421_p10)
}
  0x1b   :  { %s2425_s16 = scalar_lea.vmem %s2624_s28, 256  ;;  %p2430_p12 = scmp.lt.s32.totalorder %s2624_s28, %s2624_s28 }
  0x1c   :  { %p2426_p11 = scmp.ne.s32.totalorder %s2624_s28, %s2425_s16  ;;  %p2431_p13 = scmp.lt.s32.totalorder %s2425_s16, %s2425_s16 }
  0x1e   :  { %p2432_p0 = por %p2431_p13, %p2430_p12 }
  0x20   :  { %p2433_p1 = pnand %p2432_p0, %p2426_p11 }
  0x22   :  { %2436 = shalt.err (!%p2433_p1)
}
  0x23   :  { %71 = dma.hbm_to_vmem [thread:$0]  %s2991_s4, 256, %s2624_s28, [#allocation9], %s2535_s20, %s2535_s20, %s2536_s21  }
  0x24   :  { %s2537_s17 = smov [#allocation2]   ;;  %s2538_s19 = smov [#allocation7]  }
  0x25   :  { %s27_s18 = sshll.u32 %s2537_s17, 4  ;;  %s51_s22 = sshll.u32 %s2538_s19, 4  ;;  %s28_s18 = int_to_ptr.vmem [resolvable:$true] %s27_s18  ;;  %s2661_s22 = int_to_ptr.vmem [resolvable:$true] %s51_s22 }
  0x26   :  { %s2437_s25 = scalar_lea.hbm %s2987_s0, 256 }
  0x27   :  { %p2438_p2 = scmp.ne.s32.totalorder %s2987_s0, %s2437_s25  ;;  %p2441_p3 = scmp.lt.u32.totalorder %s2437_s25, %s2987_s0 }
  0x29   :  { %p2443_p4 = pnand %p2441_p3, %p2438_p2 }
  0x2b   :  { %2446 = shalt.err (!%p2443_p4)
}
  0x2c   :  { %s2447_s4 = scalar_lea.vmem %s28_s18, 256  ;;  %p2452_p6 = scmp.lt.s32.totalorder %s28_s18, %s28_s18 }
  0x2d   :  { %p2448_p5 = scmp.ne.s32.totalorder %s28_s18, %s2447_s4  ;;  %p2453_p7 = scmp.lt.s32.totalorder %s2447_s4, %s2447_s4 }
  0x2f   :  { %p2454_p8 = por %p2453_p7, %p2452_p6 }
  0x31   :  { %p2455_p9 = pnand %p2454_p8, %p2448_p5 }
  0x33   :  { %2458 = shalt.err (!%p2455_p9)
}
  0x34   :  { %33 = dma.hbm_to_vmem [thread:$0]  %s2987_s0, 256, %s28_s18, [#allocation3], %s2535_s20, %s2535_s20, %s2536_s21  }
  0x35   :  { %s2459_s26 = scalar_lea.hbm %s2989_s2, 256 }
  0x36   :  { %p2460_p10 = scmp.ne.s32.totalorder %s2989_s2, %s2459_s26  ;;  %p2463_p11 = scmp.lt.u32.totalorder %s2459_s26, %s2989_s2 }
  0x38   :  { %p2465_p12 = pnand %p2463_p11, %p2460_p10 }
  0x3a   :  { %2468 = shalt.err (!%p2465_p12)
}
  0x3b   :  { %s2469_s25 = scalar_lea.vmem %s2661_s22, 256  ;;  %p2474_p0 = scmp.lt.s32.totalorder %s2661_s22, %s2661_s22 }
  0x3c   :  { %p2470_p13 = scmp.ne.s32.totalorder %s2661_s22, %s2469_s25  ;;  %p2475_p1 = scmp.lt.s32.totalorder %s2469_s25, %s2469_s25 }
  0x3e   :  { %p2476_p2 = por %p2475_p1, %p2474_p0 }
  0x40   :  { %p2477_p3 = pnand %p2476_p2, %p2470_p13 }
  0x42   :  { %2480 = shalt.err (!%p2477_p3)
}
  0x43   :  { %57 = dma.hbm_to_vmem [thread:$0]  %s2989_s2, 256, %s2661_s22, [#allocation6], %s2535_s20, %s2535_s20, %s2536_s21  }
  0x44   :  { %s2539_s27 = smov [#allocation10]   ;;  %s2481_s4 = scalar_lea.hbm %s2994_s7, 256 }
  0x45   :  { %s81_s29 = sshll.u32 %s2539_s27, 4  ;;  %p2482_p4 = scmp.ne.s32.totalorder %s2994_s7, %s2481_s4  ;;  %s82_s29 = int_to_ptr.vmem [resolvable:$true] %s81_s29 }
  0x46   :  { %p2485_p5 = scmp.lt.u32.totalorder %s2481_s4, %s2994_s7 }
  0x48   :  { %p2487_p6 = pnand %p2485_p5, %p2482_p4 }
  0x4a   :  { %2490 = shalt.err (!%p2487_p6)
}
  0x4b   :  { %s2491_s26 = scalar_lea.vmem %s82_s29, 256  ;;  %p2496_p8 = scmp.lt.s32.totalorder %s82_s29, %s82_s29 }
  0x4c   :  { %p2492_p7 = scmp.ne.s32.totalorder %s82_s29, %s2491_s26  ;;  %p2497_p9 = scmp.lt.s32.totalorder %s2491_s26, %s2491_s26 }
  0x4e   :  { %p2498_p10 = por %p2497_p9, %p2496_p8 }
  0x50   :  { %p2499_p11 = pnand %p2498_p10, %p2492_p7 }
  0x52   :  { %2502 = shalt.err (!%p2499_p11)
}
  0x53   :  { %87 = dma.hbm_to_vmem [thread:$0]  %s2994_s7, 256, %s82_s29, [#allocation9], %s2535_s20, %s2535_s20, %s2536_s21  }
  0x54   :  { %2525 = dma.done.wait [#allocation3], 256  }
  0x55   :  { %2526 = vsyncadd [#allocation3], 4294967040 }
  0x56   :  { %2527 = dma.done.wait [#allocation6], 512  }
  0x57   :  { %2528 = vsyncadd [#allocation6], 4294966784 }
  0x58   :  { %2529 = dma.done.wait [#allocation9], 512  }
  0x59   :  { %2530 = vsyncadd [#allocation9], 4294966784  ;;  %vm126_vm0 = vcmask 261120   ;;  %v115_v0 = vld [vmem:[%s2992_s5] sm:$0xff]  ;;  %v116_v1 = vld [vmem:[%s2992_s5 + $0x8] sm:$0xff]  ;;  %s2540_s14 = smov 64  }
  0x5a   :  { %v117_v2 = vld [vmem:[%s2992_s5 + $0x10] sm:$0xff]  ;;  %v2296_v3 = vpack.c.bf16 %v116_v1, %v115_v0  ;;  %v118_v4 = vld [vmem:[%s2992_s5 + $0x18] sm:$0xff]  ;;  %v113_v5 = vld [vmem:[#allocation2] sm:$0xff]  ;;  %s2541_s4 = smov 96   ;;  %vm217_vm1 = vcmask 130048   ;;  %s2544_s23 = smov 112  }
  0x5b   :  { %v2300_v6 = vpack.c.bf16 %v118_v4, %v117_v2  ;;  %2216 = vmatprep.mubr.msk.f32.mxu0 %vm126_vm0, %v113_v5  ;;  %v114_v7 = vld [vmem:[#allocation2 + $0x8] sm:$0xff]  ;;  %v208_v8 = vld [vmem:[#allocation10] sm:$0xff]  ;;  %v386_v16 = vld [vmem:[#allocation5 + $0x8] sm:$0xff]  ;;  %s2545_s24 = smov 104   ;;  %vm676_vm2 = vcmask 64512   ;;  %vm2547_vm3 = vmmov 0  }
  0x5c   :  { %2297 = vmatprep.subr.bf16.mxu0 %v2296_v3  ;;  %v209_v9 = vld [vmem:[#allocation10 + $0x8] sm:$0xff]  ;;  %v299_v11 = vld [vmem:[%s2996_s9] sm:$0xff]  ;;  %v385_v17 = vld [vmem:[#allocation5] sm:$0xff]  ;;  %vm1989_vm5 = vcmask 195584   ;;  %vm2098_vm6 = vcmask 523264   ;;  %vm2101_vm7 = vcmask 785408  }
  0x5d   :  { %2299 = vmatpush3.bf16.msra.mxu0 %v2296_v3  ;;  %v2304_v10 = vpack.c.bf16 %v209_v9, %v208_v8  ;;  %v300_v12 = vld [vmem:[%s2996_s9 + $0x8] sm:$0xff]  ;;  %v387_v14 = vld [vmem:[#allocation7] sm:$0xff]  ;;  %v301_v20 = vld [vmem:[%s2996_s9 + $0x10] sm:$0xff]  ;;  %s2553_s15 = smov [#allocation11]  }
  0x5e   :  { %2301 = vmatprep.subr.bf16.mxu0 %v2300_v6  ;;  %v2308_v13 = vpack.c.bf16 %v300_v12, %v299_v11  ;;  %402 = vrot.lane.b32.xlu1 %v387_v14, %s2540_s14  ;;  %v388_v15 = vld [vmem:[#allocation7 + $0x8] sm:$0xff]  ;;  %v2125_v18 = vld [vmem:[%s2993_s6] ss:$0 sm:$0xff]  ;;  %v302_v21 = vld [vmem:[%s2996_s9 + $0x18] sm:$0xff]  ;;  %s2111_s16 = sshll.u32 %s2553_s15, 4  ;;  %s2112_s16 = int_to_ptr.vmem [resolvable:$true] %s2111_s16 }
  0x5f   :  { %2305 = vmatprep.subr.bf16.mxu1 %v2304_v10  ;;  %446 = vrot.lane.b32.xlu0 %v387_v14, %s2541_s4  ;;  %v2312_v25 = vpack.c.bf16 %v302_v21, %v301_v20  ;;  %v2128_v27 = vld [vmem:[%s2995_s8] ss:$0 sm:$0xff]  ;;  %vm2895_vm4 = vmpackc.low %vm217_vm1, %vm217_vm1  ;;  %p2508_p13 = scmp.lt.s32.totalorder %s2112_s16, %s2112_s16 }
  0x60   :  { %2307 = vmatpush3.bf16.msra.mxu1 %v2304_v10  ;;  %v2134_v35 = vld [vmem:[%s2990_s3] ss:$0 sm:$0xff]  ;;  %s2542_s3 = smov 32  }
  0x61   :  { %2303 = vmatpush3.bf16.msra.mxu0 %v2300_v6  ;;  %2309 = vmatprep.subr.bf16.mxu1 %v2308_v13  ;;  %v2131_v37 = vld [vmem:[%s2997_s10] ss:$0 sm:$0xff]  ;;  %s2543_s10 = smov 120  }
  0x62   :  { %404 = vrot.lane.b32.xlu1 %v388_v15, %s2540_s14 }
  0x63   :  { %448 = vrot.lane.b32.xlu0 %v388_v15, %s2541_s4 }
  0x64   :  { %2217 = vmatmul.mubr.msk.f32.vlgmr.msra.gmra.mrb[0].mxu0 %vm126_vm0, %v114_v7 }
  0x66   :  { %440 = vrot.lane.b32.xlu1 %v386_v16, %s2540_s14 }
  0x67   :  { %438 = vrot.lane.b32.xlu0 %v385_v17, %s2540_s14 }
  0xd0   :  { %v403_v36 = vpop.permute.xlu1 %402 }
  0xd1   :  { %v447_v26 = vpop.permute.xlu0 %446 }
  0xd4   :  { %v405_v44 = vpop.permute.xlu1 %404 }
  0xd5   :  { %v449_v31 = vpop.permute.xlu0 %448 }
  0xd8   :  { %v441_v49 = vpop.permute.xlu1 %440 }
  0xd9   :  { %v439_v50 = vpop.permute.xlu0 %438 }
 0x137   :  { %v2218_v19 = vpop.f32.mrb[0].mxu0 }
 0x138   :  { %v199_v22 = vpop.f32.mrb[1].mxu0  ;;  %v205_v24 = vadd.f32 %v2218_v19, %v2125_v18 }
 0x139   :  { %v200_v23 = vadd.f32 %v2125_v18, %v199_v22 }
 0x13b   :  { %2223 = vmatprep.mubr.msk.f32.mxu1 %vm217_vm1, %v200_v23 }
 0x13c   :  { %2224 = vmatmul.mubr.msk.f32.vlgmr.msra.gmra.mrb[0].mxu1 %vm217_vm1, %v205_v24 }
 0x13d   :  { %2311 = vmatpush3.bf16.msra.mxu1 %v2308_v13  ;;  %2234 = vmatprep.mubr.msk.f32.mxu1 %vm126_vm0, %v113_v5 }
 0x13e   :  { %2313 = vmatprep.subr.bf16.mxu1 %v2312_v25 }
 0x141   :  { %2315 = vmatpush3.bf16.msra.mxu1 %v2312_v25 }
 0x144   :  { %2235 = vmatmul.mubr.msk.f32.vlgmr.msra.gmra.mrb[2].mxu1 %vm126_vm0, %v114_v7 }
 0x20f   :  { %v2225_v28 = vpop.f32.mrb[0].mxu1 }
 0x210   :  { %v2755_v29 = vadd.f32 %v2225_v28, %v2128_v27  ;;  %v290_v30 = vpop.f32.mrb[1].mxu1 }
 0x211   :  { %v2757_v32 = vadd.f32 %v2128_v27, %v290_v30 }
 0x212   :  { %v453_v33 = vmul.f32 %v449_v31, %v2755_v29  ;;  %v465_v38 = vmul.f32 %v2134_v35, %v2755_v29  ;;  %v445_v52 = vmul.f32 %v441_v49, %v2755_v29 }
 0x213   :  { %v452_v34 = vmul.f32 %v447_v26, %v2757_v32  ;;  %v464_v39 = vmul.f32 %v2134_v35, %v2757_v32  ;;  %v444_v56 = vmul.f32 %v439_v50, %v2757_v32 }
 0x214   :  { %458 = vrot.lane.b32.xlu1 %v453_v33, %s2541_s4 }
 0x215   :  { %456 = vrot.lane.b32.xlu0 %v452_v34, %s2541_s4 }
 0x217   :  { %v2236_v40 = vpop.f32.mrb[2].mxu1 }
 0x218   :  { %470 = vrot.lane.b32.xlu1 %v465_v38, %s2540_s14  ;;  %v382_v41 = vadd.f32 %v2236_v40, %v2131_v37  ;;  %v376_v42 = vpop.f32.mrb[3].mxu1 }
 0x219   :  { %468 = vrot.lane.b32.xlu0 %v464_v39, %s2540_s14  ;;  %v377_v43 = vadd.f32 %v2131_v37, %v376_v42 }
 0x21a   :  { %v409_v45 = vmul.f32 %v405_v44, %v382_v41  ;;  %v427_v47 = vmul.f32 %v2134_v35, %v382_v41  ;;  %v518_v44 = vld [vmem:[#allocation8] sm:$0xff] }
 0x21b   :  { %v408_v46 = vmul.f32 %v403_v36, %v377_v43  ;;  %v426_v48 = vmul.f32 %v2134_v35, %v377_v43 }
 0x21c   :  { %394 = vrot.lane.b32.xlu1 %v386_v16, %s2542_s3 }
 0x21d   :  { %392 = vrot.lane.b32.xlu0 %v385_v17, %s2542_s3 }
 0x220   :  { %414 = vrot.lane.b32.xlu1 %v409_v45, %s2541_s4 }
 0x221   :  { %412 = vrot.lane.b32.xlu0 %v408_v46, %s2541_s4 }
 0x224   :  { %432 = vrot.lane.b32.xlu1 %v427_v47, %s2542_s3 }
 0x225   :  { %430 = vrot.lane.b32.xlu0 %v426_v48, %s2542_s3 }
 0x286   :  { %v459_v51 = vpop.permute.xlu1 %458 }
 0x287   :  { %v457_v53 = vpop.permute.xlu0 %456  ;;  %v463_v54 = vsub.f32 %v445_v52, %v459_v51 }
 0x288   :  { %v462_v59 = vsub.f32 %v444_v56, %v457_v53 }
 0x28a   :  { %v471_v55 = vpop.permute.xlu1 %470 }
 0x28b   :  { %v2781_v57 = vadd.f32 %v471_v55, %v463_v54  ;;  %v469_v58 = vpop.permute.xlu0 %468 }
 0x28c   :  { %v2787_v61 = vadd.f32 %v469_v58, %v462_v59 }
 0x28d   :  { %494 = vrot.lane.b32.xlu1 %v2781_v57, %s2543_s10  ;;  %498 = vrot.lane.b32.xlu0 %v2781_v57, %s2544_s23 }
 0x28e   :  { %v395_v60 = vpop.permute.xlu1 %394 }
 0x28f   :  { %v393_v62 = vpop.permute.xlu0 %392  ;;  %v399_v1 = vmul.f32 %v395_v60, %v382_v41 }
 0x290   :  { %v398_v4 = vmul.f32 %v393_v62, %v377_v43  ;;  %v519_v43 = vld [vmem:[#allocation8 + $0x8] sm:$0xff] }
 0x291   :  { %500 = vrot.lane.b32.xlu1 %v2787_v61, %s2545_s24  ;;  %492 = vrot.lane.b32.xlu0 %v2787_v61, %s2543_s10 }
 0x292   :  { %v415_v63 = vpop.permute.xlu1 %414 }
 0x293   :  { %v413_v0 = vpop.permute.xlu0 %412  ;;  %v419_v3 = vsub.f32 %v399_v1, %v415_v63 }
 0x294   :  { %v418_v7 = vsub.f32 %v398_v4, %v413_v0 }
 0x295   :  { %502 = vrot.lane.b32.xlu1 %v2781_v57, %s2545_s24  ;;  %496 = vrot.lane.b32.xlu0 %v2787_v61, %s2544_s23 }
 0x296   :  { %v433_v2 = vpop.permute.xlu1 %432 }
 0x297   :  { %v437_v5 = vadd.f32 %v433_v2, %v419_v3  ;;  %v431_v6 = vpop.permute.xlu0 %430 }
 0x298   :  { %v436_v8 = vadd.f32 %v431_v6, %v418_v7 }
 0x299   :  { %522 = vrot.lane.b32.xlu1 %v2781_v57, %s2540_s14  ;;  %520 = vrot.lane.b32.xlu0 %v2787_v61, %s2540_s14 }
 0x29d   :  { %480 = vrot.lane.b32.xlu1 %v437_v5, %s2543_s10  ;;  %484 = vrot.lane.b32.xlu0 %v437_v5, %s2544_s23 }
 0x2a1   :  { %488 = vrot.lane.b32.xlu1 %v437_v5, %s2545_s24  ;;  %478 = vrot.lane.b32.xlu0 %v436_v8, %s2543_s10 }
 0x2a5   :  { %486 = vrot.lane.b32.xlu1 %v436_v8, %s2545_s24  ;;  %482 = vrot.lane.b32.xlu0 %v436_v8, %s2544_s23 }
 0x2a9   :  { %674 = vrot.lane.b32.xlu1 %v437_v5, %s2541_s4  ;;  %672 = vrot.lane.b32.xlu0 %v436_v8, %s2541_s4 }
 0x2ff   :  { %v495_v9 = vpop.permute.xlu1 %494  ;;  %v499_v10 = vpop.permute.xlu0 %498 }
 0x300   :  { %526 = vrot.lane.b32.xlu1 %v495_v9, %s2540_s14  ;;  %530 = vrot.lane.b32.xlu0 %v499_v10, %s2540_s14 }
 0x303   :  { %v501_v11 = vpop.permute.xlu1 %500  ;;  %v493_v12 = vpop.permute.xlu0 %492 }
 0x304   :  { %524 = vrot.lane.b32.xlu0 %v493_v12, %s2540_s14 }
 0x307   :  { %v503_v13 = vpop.permute.xlu1 %502  ;;  %v497_v14 = vpop.permute.xlu0 %496 }
 0x308   :  { %534 = vrot.lane.b32.xlu1 %v503_v13, %s2540_s14  ;;  %528 = vrot.lane.b32.xlu0 %v497_v14, %s2540_s14 }
 0x30b   :  { %v523_v15 = vpop.permute.xlu1 %522  ;;  %v521_v16 = vpop.permute.xlu0 %520 }
 0x30c   :  { %532 = vrot.lane.b32.xlu1 %v501_v11, %s2540_s14  ;;  %s2551_s14 = smov 16  }
 0x30f   :  { %v481_v17 = vpop.permute.xlu1 %480  ;;  %v485_v18 = vpop.permute.xlu0 %484 }
 0x310   :  { %758 = vrot.lane.b32.xlu1 %v481_v17, %s2541_s4 }
 0x313   :  { %v489_v19 = vpop.permute.xlu1 %488  ;;  %v479_v20 = vpop.permute.xlu0 %478 }
 0x314   :  { %924 = vrot.lane.b32.xlu1 %v489_v19, %s2541_s4 }
 0x317   :  { %v487_v21 = vpop.permute.xlu1 %486  ;;  %v483_v22 = vpop.permute.xlu0 %482 }
 0x318   :  { %922 = vrot.lane.b32.xlu1 %v487_v21, %s2541_s4 }
 0x31b   :  { %v673_v23 = vpop.permute.xlu0 %672  ;;  %v675_v25 = vpop.permute.xlu1 %674 }
 0x31c   :  { %2239 = vmatprep.mubr.msk.f32.mxu0 %vm676_vm2, %v673_v23 }
 0x326   :  { %544 = vxpose.xlu0.b32.start [1/2] (short) (narrow) %v521_v16, 8 }
 0x32a   :  { %545 = vxpose.xlu0.b32.end [2/2] (short) (narrow) %v523_v15, 8 }
 0x353   :  { %841 = vrot.lane.b32.xlu0 %v485_v18, %s2541_s4 }
 0x357   :  { %756 = vrot.lane.b32.xlu0 %v479_v20, %s2541_s4 }
 0x35b   :  { %839 = vrot.lane.b32.xlu0 %v483_v22, %s2541_s4  ;;  %v2546_v22 = vmov 0.0|0.0  }
 0x372   :  { %v531_v24 = vpop.permute.xlu0 %530  ;;  %v527_v27 = vpop.permute.xlu1 %526 }
 0x376   :  { %v525_v26 = vpop.permute.xlu0 %524 }
 0x377   :  { %576 = vxpose.xlu1.b32.start [1/2] (short) (narrow) %v525_v26, 8 }
 0x37a   :  { %v529_v28 = vpop.permute.xlu0 %528  ;;  %v535_v30 = vpop.permute.xlu1 %534 }
 0x37b   :  { %577 = vxpose.xlu1.b32.end [2/2] (short) (narrow) %v527_v27, 8  ;;  %608 = vxpose.xlu0.b32.start [1/2] (short) (narrow) %v529_v28, 8 }
 0x37e   :  { %v533_v31 = vpop.permute.xlu1 %532 }
 0x37f   :  { %609 = vxpose.xlu0.b32.end [2/2] (short) (narrow) %v531_v24, 8 }
 0x382   :  { %v759_v37 = vpop.permute.xlu1 %758 }
 0x383   :  { %640 = vxpose.xlu0.b32.start [1/2] (short) (narrow) %v533_v31, 8 }
 0x386   :  { %v925_v38 = vpop.permute.xlu1 %924 }
 0x387   :  { %641 = vxpose.xlu0.b32.end [2/2] (short) (narrow) %v535_v30, 8 }
 0x38a   :  { %v923_v39 = vpop.permute.xlu1 %922 }
 0x399   :  { %506 = vrot.lane.b32.xlu1 %v2757_v32, %s2543_s10 }
 0x39d   :  { %510 = vrot.lane.b32.xlu1 %v2757_v32, %s2544_s23 }
 0x3a1   :  { %514 = vrot.lane.b32.xlu1 %v2757_v32, %s2545_s24 }
 0x3a6   :  { %v560_v33 = vpop.trf.xlu0 }
 0x3a7   :  { %2237 = vmatprep.subr.mxu0 %v560_v33 }
 0x3a8   :  { %2238 = vmatpush3.msra.mxu0 %v560_v33 }
 0x3a9   :  { %2240 = vmatmul.mubr.msk.f32.vlgmr.msra.gmra.mrb[2].mxu0 %vm676_vm2, %v675_v25 }
 0x3b0   :  { %508 = vrot.lane.b32.xlu0 %v2755_v29, %s2543_s10 }
 0x3b4   :  { %512 = vrot.lane.b32.xlu0 %v2755_v29, %s2544_s23 }
 0x3c5   :  { %v842_v34 = vpop.permute.xlu0 %841 }
 0x3c9   :  { %v757_v35 = vpop.permute.xlu0 %756 }
 0x3ca   :  { %2244 = vmatprep.mubr.msk.f32.mxu0 %vm676_vm2, %v757_v35 }
 0x3cd   :  { %v840_v36 = vpop.permute.xlu0 %839 }
 0x3ce   :  { %2249 = vmatprep.mubr.msk.f32.mxu1 %vm676_vm2, %v840_v36 }
 0x3f7   :  { %v592_v40 = vpop.trf.xlu1 }
 0x3f8   :  { %2242 = vmatprep.subr.mxu0 %v592_v40 }
 0x3f9   :  { %2243 = vmatpush3.msra.mxu0 %v592_v40 }
 0x3fa   :  { %2245 = vmatmul.mubr.msk.f32.vlgmr.msra.gmra.mrb[4].mxu0 %vm676_vm2, %v759_v37 }
 0x3fb   :  { %2254 = vmatprep.mubr.msk.f32.mxu0 %vm676_vm2, %v923_v39  ;;  %v624_v41 = vpop.trf.xlu0 }
 0x3fc   :  { %2247 = vmatprep.subr.mxu1 %v624_v41 }
 0x3fd   :  { %2248 = vmatpush3.msra.mxu1 %v624_v41 }
 0x3fe   :  { %2250 = vmatmul.mubr.msk.f32.vlgmr.msra.gmra.mrb[4].mxu1 %vm676_vm2, %v842_v34  ;;  %2316 = vmatprep.subr.bf16.mxu1 %v2546_v22 }
 0x403   :  { %v656_v42 = vpop.trf.xlu0 }
 0x404   :  { %2252 = vmatprep.subr.mxu0 %v656_v42 }
 0x405   :  { %2253 = vmatpush3.msra.mxu0 %v656_v42 }
 0x406   :  { %2255 = vmatmul.mubr.msk.f32.vlgmr.msra.gmra.mrb[6].mxu0 %vm676_vm2, %v925_v38  ;;  %2320 = vmatprep.subr.bf16.mxu0 %v2546_v22 }
 0x40b   :  { %v507_v7 = vpop.permute.xlu1 %506 }
 0x40f   :  { %v511_v8 = vpop.permute.xlu1 %510 }
 0x413   :  { %v515_v10 = vpop.permute.xlu1 %514 }
 0x422   :  { %v509_v9 = vpop.permute.xlu0 %508 }
 0x426   :  { %v513_v11 = vpop.permute.xlu0 %512 }
 0x47c   :  { %v2241_v45 = vpop.f32.mrb[2].mxu0 }
 0x47d   :  { %v753_v46 = vadd.f32 %v2241_v45, %v519_v43  ;;  %v747_v47 = vpop.f32.mrb[3].mxu0 }
 0x47e   :  { %v748_v48 = vadd.f32 %v747_v47, %v518_v44 }
 0x47f   :  { %v1008_v49 = vsel %vm217_vm1, %v753_v46, -inf }
 0x480   :  { %1009 = vmax.xlane.f32.xlu0 %v1008_v49  ;;  %v1005_v50 = vsel %vm217_vm1, %v748_v48, -inf }
 0x481   :  { %1006 = vmax.xlane.f32.xlu1 %v1005_v50 }
 0x4cd   :  { %v2246_v51 = vpop.f32.mrb[4].mxu0 }
 0x4ce   :  { %v836_v52 = vadd.f32 %v2246_v51, %v519_v43  ;;  %v830_v53 = vpop.f32.mrb[5].mxu0 }
 0x4cf   :  { %v831_v54 = vadd.f32 %v830_v53, %v518_v44 }
 0x4d0   :  { %v1014_v55 = vsel %vm217_vm1, %v836_v52, -inf }
 0x4d1   :  { %1015 = vmax.xlane.f32.xlu1 %v1014_v55  ;;  %v2251_v56 = vpop.f32.mrb[4].mxu1  ;;  %v1011_v62 = vsel %vm217_vm1, %v831_v54, -inf }
 0x4d2   :  { %v919_v58 = vadd.f32 %v2251_v56, %v519_v43  ;;  %v913_v59 = vpop.f32.mrb[5].mxu1 }
 0x4d3   :  { %v914_v60 = vadd.f32 %v913_v59, %v518_v44 }
 0x4d4   :  { %v1020_v63 = vsel %vm217_vm1, %v919_v58, -inf }
 0x4d5   :  { %1012 = vmax.xlane.f32.xlu1 %v1011_v62  ;;  %1021 = vmax.xlane.f32.xlu0 %v1020_v63  ;;  %v1017_v0 = vsel %vm217_vm1, %v914_v60, -inf }
 0x4d9   :  { %1018 = vmax.xlane.f32.xlu1 %v1017_v0  ;;  %v2256_v1 = vpop.f32.mrb[6].mxu0 }
 0x4da   :  { %v1002_v2 = vadd.f32 %v2256_v1, %v519_v43  ;;  %v996_v3 = vpop.f32.mrb[7].mxu0 }
 0x4db   :  { %v997_v4 = vadd.f32 %v996_v3, %v518_v44 }
 0x4dc   :  { %v1026_v5 = vsel %vm217_vm1, %v1002_v2, -inf }
 0x4dd   :  { %1027 = vmax.xlane.f32.xlu0 %v1026_v5  ;;  %v1023_v6 = vsel %vm217_vm1, %v997_v4, -inf }
 0x4de   :  { %1024 = vmax.xlane.f32.xlu1 %v1023_v6 }
 0x4ef   :  { %516 = vrot.lane.b32.xlu1 %v2755_v29, %s2545_s24 }
 0x4f3   :  { %1097 = vrot.lane.b32.xlu0 %v507_v7, %s2541_s4  ;;  %1093 = vrot.lane.b32.xlu1 %v2757_v32, %s2541_s4 }
 0x4f7   :  { %1101 = vrot.lane.b32.xlu0 %v511_v8, %s2541_s4  ;;  %1095 = vrot.lane.b32.xlu1 %v2755_v29, %s2541_s4 }
 0x4fb   :  { %1099 = vrot.lane.b32.xlu1 %v509_v9, %s2541_s4 }
 0x4ff   :  { %1105 = vrot.lane.b32.xlu1 %v515_v10, %s2541_s4 }
 0x503   :  { %1103 = vrot.lane.b32.xlu1 %v513_v11, %s2541_s4 }
 0x50d   :  { %v1010_v12 = vpop.xlane.xlu0 %1009 }
 0x50e   :  { %v1007_v13 = vpop.xlane.xlu1 %1006  ;;  %v1030_v15 = vsub.f32 %v753_v46, %v1010_v12 }
 0x50f   :  { %v1029_v14 = vsub.f32 %v748_v48, %v1007_v13 }
 0x510   :  { %v1039_v17 = vmul.f32 1.442695, %v1030_v15 }
 0x511   :  { %v1037_v16 = vmul.f32 1.442695, %v1029_v14 }
 0x513   :  { %2361 = vpow2.f32 %v1037_v16 }
 0x514   :  { %2363 = vpow2.f32 %v1039_v17 }
 0x51d   :  { %v2858_v18 = vpop.eup %2361 }
 0x51e   :  { %v1053_v19 = vsel %vm217_vm1, %v2858_v18, 0.0  ;;  %v2862_v20 = vpop.eup %2363 }
 0x51f   :  { %1054 = vadd.xlane.f32.xlu0 %v1053_v19  ;;  %v1056_v21 = vsel %vm217_vm1, %v2862_v20, 0.0 }
 0x527   :  { %1057 = vadd.xlane.f32.xlu1 %v1056_v21 }
 0x55e   :  { %v1016_v23 = vpop.xlane.xlu1 %1015 }
 0x55f   :  { %v1032_v24 = vsub.f32 %v836_v52, %v1016_v23 }
 0x561   :  { %v1043_v25 = vmul.f32 1.442695, %v1032_v24 }
 0x562   :  { %v1013_v26 = vpop.xlane.xlu1 %1012  ;;  %v1022_v27 = vpop.xlane.xlu0 %1021 }
 0x563   :  { %2365 = vpow2.f32 %v1043_v25  ;;  %v1031_v28 = vsub.f32 %v831_v54, %v1013_v26  ;;  %v1034_v30 = vsub.f32 %v919_v58, %v1022_v27  ;;  %v2548_v58 = vmov 0.0  }
 0x564   :  { %2261 = vmatprep.mubr.msk.f32.mxu1 %vm2547_vm3, %v2548_v58  ;;  %2268 = vmatprep.mubr.msk.f32.mxu0 %vm2547_vm3, %v2548_v58 }
 0x565   :  { %v1041_v31 = vmul.f32 1.442695, %v1031_v28  ;;  %v1047_v33 = vmul.f32 1.442695, %v1034_v30 }
 0x566   :  { %v1019_v34 = vpop.xlane.xlu1 %1018 }
 0x567   :  { %2367 = vpow2.f32 %v1041_v31  ;;  %v1033_v35 = vsub.f32 %v914_v60, %v1019_v34 }
 0x568   :  { %2369 = vpow2.f32 %v1047_v33 }
 0x569   :  { %v1045_v36 = vmul.f32 1.442695, %v1033_v35 }
 0x56a   :  { %v1028_v37 = vpop.xlane.xlu0 %1027 }
 0x56b   :  { %2371 = vpow2.f32 %v1045_v36  ;;  %v1036_v38 = vsub.f32 %v1002_v2, %v1028_v37  ;;  %v1025_v39 = vpop.xlane.xlu1 %1024 }
 0x56c   :  { %v1035_v40 = vsub.f32 %v997_v4, %v1025_v39 }
 0x56d   :  { %v2366_v41 = vpop.eup %2365  ;;  %v1051_v42 = vmul.f32 1.442695, %v1036_v38 }
 0x56e   :  { %v1049_v43 = vmul.f32 1.442695, %v1035_v40  ;;  %v1062_v44 = vsel %vm217_vm1, %v2366_v41, 0.0  ;;  %v1098_v62 = vpop.permute.xlu0 %1097 }
 0x56f   :  { %2373 = vpow2.f32 %v1051_v42  ;;  %1063 = vadd.xlane.f32.xlu0 %v1062_v44  ;;  %v517_v55 = vpop.permute.xlu1 %516 }
 0x570   :  { %2375 = vpow2.f32 %v1049_v43 }
 0x571   :  { %v2368_v45 = vpop.eup %2367 }
 0x572   :  { %v2869_v46 = vpop.eup %2369  ;;  %v1059_v47 = vsel %vm217_vm1, %v2368_v45, 0.0  ;;  %v1102_v0 = vpop.permute.xlu0 %1101 }
 0x573   :  { %1060 = vadd.xlane.f32.xlu0 %v1059_v47  ;;  %v1068_v48 = vsel %vm217_vm1, %v2869_v46, 0.0  ;;  %v1094_v56 = vpop.permute.xlu1 %1093 }
 0x574   :  { %1069 = vadd.xlane.f32.xlu1 %v1068_v48 }
 0x575   :  { %v2874_v49 = vpop.eup %2371 }
 0x576   :  { %v1065_v50 = vsel %vm217_vm1, %v2874_v49, 0.0 }
 0x577   :  { %1066 = vadd.xlane.f32.xlu0 %v1065_v50  ;;  %v1096_v59 = vpop.permute.xlu1 %1095 }
 0x579   :  { %v2878_v51 = vpop.eup %2373 }
 0x57a   :  { %v1074_v52 = vsel %vm217_vm1, %v2878_v51, 0.0  ;;  %v2882_v53 = vpop.eup %2375 }
 0x57b   :  { %1075 = vadd.xlane.f32.xlu0 %v1074_v52  ;;  %v1071_v54 = vsel %vm217_vm1, %v2882_v53, 0.0  ;;  %v1100_v60 = vpop.permute.xlu1 %1099 }
 0x57f   :  { %1072 = vadd.xlane.f32.xlu0 %v1071_v54  ;;  %v1106_v63 = vpop.permute.xlu1 %1105 }
 0x583   :  { %v1104_v1 = vpop.permute.xlu1 %1103 }
 0x595   :  { %1107 = vrot.lane.b32.xlu0 %v517_v55, %s2541_s4 }
 0x5a7   :  { %1117 = vxpose.xlu1.b32.start [1/2] (short) (narrow) %v1094_v56, 8 }
 0x5ab   :  { %1118 = vxpose.xlu1.b32.end [2/2] (short) (narrow) %v1096_v59, 8 }
 0x5ac   :  { %v1055_v2 = vpop.xlane.xlu0 %1054 }
 0x5ad   :  { %2377 = vrcp.f32 %v1055_v2 }
 0x5af   :  { %1213 = vxpose.xlu1.b32.start [1/2] (short) (narrow) %v1106_v63, 8 }
 0x5b3   :  { %1149 = vxpose.xlu0.b32.start [1/2] (short) (narrow) %v1098_v62, 8 }
 0x5b4   :  { %v1058_v3 = vpop.xlane.xlu1 %1057 }
 0x5b5   :  { %2379 = vrcp.f32 %v1058_v3 }
 0x5b7   :  { %1150 = vxpose.xlu0.b32.end [2/2] (short) (narrow) %v1100_v60, 8  ;;  %v2378_v4 = vpop.eup %2377 }
 0x5b8   :  { %v1085_v6 = vmul.f32 %v2378_v4, %v2858_v18 }
 0x5bb   :  { %1181 = vxpose.xlu0.b32.start [1/2] (short) (narrow) %v1102_v0, 8 }
 0x5bf   :  { %v2380_v5 = vpop.eup %2379  ;;  %1182 = vxpose.xlu0.b32.end [2/2] (short) (narrow) %v1104_v1, 8 }
 0x5c0   :  { %v1086_v7 = vmul.f32 %v2380_v5, %v2862_v20 }
 0x5c2   :  { %v2317_v9 = vpack.c.bf16 %v1086_v7, %v1085_v6 }
 0x5c4   :  { %2319 = vmatpush3.bf16.xpose.msk.msra.mxu1 %vm2895_vm4, %v2317_v9 }
 0x5c5   :  { %2324 = vmatprep.subr.bf16.mxu1 %v2546_v22 }
 0x5fc   :  { %v1064_v10 = vpop.xlane.xlu0 %1063 }
 0x5fd   :  { %2381 = vrcp.f32 %v1064_v10 }
 0x600   :  { %v1061_v11 = vpop.xlane.xlu0 %1060 }
 0x601   :  { %2383 = vrcp.f32 %v1061_v11  ;;  %v1070_v21 = vpop.xlane.xlu1 %1069 }
 0x604   :  { %v1067_v12 = vpop.xlane.xlu0 %1066 }
 0x605   :  { %2385 = vrcp.f32 %v1067_v12 }
 0x606   :  { %2387 = vrcp.f32 %v1070_v21 }
 0x607   :  { %v2382_v14 = vpop.eup %2381 }
 0x608   :  { %v1076_v13 = vpop.xlane.xlu0 %1075  ;;  %v1088_v16 = vmul.f32 %v2382_v14, %v2366_v41 }
 0x60b   :  { %v2384_v15 = vpop.eup %2383 }
 0x60c   :  { %v1087_v17 = vmul.f32 %v2384_v15, %v2368_v45  ;;  %v1073_v18 = vpop.xlane.xlu0 %1072 }
 0x60d   :  { %2389 = vrcp.f32 %v1073_v18 }
 0x60e   :  { %v2321_v19 = vpack.c.bf16 %v1088_v16, %v1087_v17  ;;  %2391 = vrcp.f32 %v1076_v13 }
 0x60f   :  { %v2386_v23 = vpop.eup %2385 }
 0x610   :  { %2323 = vmatpush3.bf16.xpose.msk.msra.mxu0 %vm2895_vm4, %v2321_v19  ;;  %v1108_v20 = vpop.permute.xlu0 %1107  ;;  %v2388_v24 = vpop.eup %2387  ;;  %v1089_v25 = vmul.f32 %v2386_v23, %v2874_v49  ;;  %v2549_v49 = vmov 1983009808  }
 0x611   :  { %1214 = vxpose.xlu1.b32.end [2/2] (short) (narrow) %v1108_v20, 8  ;;  %2328 = vmatprep.subr.bf16.mxu0 %v2546_v22  ;;  %v1090_v26 = vmul.f32 %v2388_v24, %v2869_v46  ;;  %v1692_v50 = vunpack.c.l.s4 %v2549_v49 }
 0x613   :  { %v2325_v28 = vpack.c.bf16 %v1090_v26, %v1089_v25  ;;  %v1693_v55 = vunpack.c.0.s8 %v1692_v50 }
 0x617   :  { %v2390_v22 = vpop.eup %2389 }
 0x618   :  { %v2392_v30 = vpop.eup %2391  ;;  %v1091_v31 = vmul.f32 %v2390_v22, %v2882_v53  ;;  %v2550_v53 = vmov 1934713408  }
 0x619   :  { %v1092_v33 = vmul.f32 %v2392_v30, %v2878_v51  ;;  %v1694_v51 = vlaneseq  ;;  %v1724_v54 = vunpack.c.l.s4 %v2550_v53 }
 0x61b   :  { %v2329_v35 = vpack.c.bf16 %v1092_v33, %v1091_v31  ;;  %v1695_v56 = vshrl.u32 %v1694_v51, 7  ;;  %v1725_v59 = vunpack.c.0.s8 %v1724_v54 }
 0x61d   :  { %v1696_v60 = vsub.s32 %v1693_v55, %v1695_v56  ;;  %v2921_v4 = vsub.s32 %v1725_v59, %v1695_v56  ;;  %v1992_v56 = vld [vmem:[%s2998_s11] sm:$0xff] }
 0x627   :  { %v1133_v27 = vpop.trf.xlu1 }
 0x628   :  { %2262 = vmatmul.mubr.msk.f32.vlgmr.msra.gmra.mrb[6].mxu1 %vm217_vm1, %v1133_v27 }
 0x629   :  { %2327 = vmatpush3.bf16.xpose.msk.msra.mxu1 %vm2895_vm4, %v2325_v28  ;;  %2275 = vmatprep.mubr.msk.f32.mxu1 %vm2547_vm3, %v2548_v58 }
 0x633   :  { %v1165_v34 = vpop.trf.xlu0 }
 0x634   :  { %2269 = vmatmul.mubr.msk.f32.vlgmr.msra.gmra.mrb[8].mxu0 %vm217_vm1, %v1165_v34 }
 0x635   :  { %2331 = vmatpush3.bf16.xpose.msk.msra.mxu0 %vm2895_vm4, %v2329_v35  ;;  %2282 = vmatprep.mubr.msk.f32.mxu0 %vm2547_vm3, %v2548_v58 }
 0x63b   :  { %v1197_v36 = vpop.trf.xlu0 }
 0x63c   :  { %2276 = vmatmul.mubr.msk.f32.vlgmr.msra.gmra.mrb[8].mxu1 %vm217_vm1, %v1197_v36 }
 0x68d   :  { %v1229_v37 = vpop.trf.xlu1 }
 0x68e   :  { %2283 = vmatmul.mubr.msk.f32.vlgmr.msra.gmra.mrb[10].mxu0 %vm217_vm1, %v1229_v37 }
 0x6fb   :  { %v1320_v38 = vpop.f32.mrb[6].mxu1 }
 0x6fc   :  { %1561 = vxpose.xlu0.b32.start.end [1/1] (short) (narrow) %v1320_v38, 16  ;;  %v2263_v39 = vpop.f32.mrb[7].mxu1 }
 0x707   :  { %v1399_v40 = vpop.f32.mrb[8].mxu0 }
 0x708   :  { %1593 = vxpose.xlu1.b32.start.end [1/1] (short) (narrow) %v1399_v40, 16  ;;  %v2270_v41 = vpop.f32.mrb[9].mxu0 }
 0x70f   :  { %v1478_v42 = vpop.f32.mrb[8].mxu1 }
 0x710   :  { %1625 = vxpose.xlu0.b32.start.end [1/1] (short) (narrow) %v1478_v42, 16  ;;  %v2277_v43 = vpop.f32.mrb[9].mxu1 }
 0x761   :  { %v1557_v44 = vpop.f32.mrb[10].mxu0 }
 0x762   :  { %1657 = vxpose.xlu1.b32.start.end [1/1] (short) (narrow) %v1557_v44, 16  ;;  %v2284_v45 = vpop.f32.mrb[11].mxu0 }
 0x77c   :  { %v1577_v46 = vpop.trf.xlu0 }
 0x780   :  { %v1578_v48 = vpop.trf.xlu0 }
 0x788   :  { %v1609_v47 = vpop.trf.xlu1 }
 0x78c   :  { %v1610_v52 = vpop.trf.xlu1 }
 0x790   :  { %v1641_v58 = vpop.trf.xlu0 }
 0x791   :  { %v1689_v62 = vcombine.low %v1577_v46, %v1641_v58  ;;  %v1690_v63 = vcombine.high %v1577_v46, %v1641_v58 }
 0x793   :  { %v1697_v5 = vrot.slane %v1689_v62, %v1696_v60  ;;  %v1704_v6 = vrot.slane %v1690_v63, %v1696_v60 }
 0x794   :  { %v1642_v1 = vpop.trf.xlu0 }
 0x795   :  { %v1757_v9 = vcombine.low %v1578_v48, %v1642_v1  ;;  %v1758_v10 = vcombine.high %v1578_v48, %v1642_v1  ;;  %v1994_v1 = vld [vmem:[%s2998_s11 + $0x10] sm:$0xff] }
 0x797   :  { %v1765_v23 = vrot.slane %v1757_v9, %v1696_v60  ;;  %v1772_v24 = vrot.slane %v1758_v10, %v1696_v60 }
 0x7e2   :  { %v1673_v0 = vpop.trf.xlu1 }
 0x7e3   :  { %v1705_v2 = vcombine.low %v1609_v47, %v1673_v0  ;;  %v1706_v3 = vcombine.high %v1609_v47, %v1673_v0  ;;  %v1993_v0 = vld [vmem:[%s2998_s11 + $0x8] sm:$0xff] }
 0x7e5   :  { %v1713_v7 = vrot.slane %v1705_v2, %v1696_v60  ;;  %v1720_v8 = vrot.slane %v1706_v3, %v1696_v60  ;;  %v1995_v2 = vld [vmem:[%s2998_s11 + $0x18] sm:$0xff]  ;;  %s2552_s11 = smov 24  }
 0x7e6   :  { %v1674_v11 = vpop.trf.xlu1 }
 0x7e7   :  { %v1721_v12 = vcombine.low %v1697_v5, %v1713_v7  ;;  %v1722_v13 = vcombine.high %v1697_v5, %v1713_v7  ;;  %v1737_v14 = vcombine.low %v1704_v6, %v1720_v8  ;;  %v1738_v15 = vcombine.high %v1704_v6, %v1720_v8 }
 0x7e8   :  { %v1773_v16 = vcombine.low %v1610_v52, %v1674_v11  ;;  %v1774_v17 = vcombine.high %v1610_v52, %v1674_v11  ;;  %v2336_v11 = vpack.c.bf16 %v1995_v2, %v1994_v1 }
 0x7e9   :  { %v1729_v18 = vrot.slane %v1721_v12, %v2921_v4  ;;  %v1736_v19 = vrot.slane %v1722_v13, %v2921_v4  ;;  %v1745_v20 = vrot.slane %v1737_v14, %v2921_v4  ;;  %v1752_v21 = vrot.slane %v1738_v15, %v2921_v4 }
 0x7ea   :  { %v1781_v25 = vrot.slane %v1773_v16, %v1696_v60  ;;  %v1788_v26 = vrot.slane %v1774_v17, %v1696_v60 }
 0x7eb   :  { %v1825_v27 = vcombine.low %v1729_v18, %v1736_v19  ;;  %v2155_v28 = vcombine.high %v1729_v18, %v1736_v19  ;;  %v1841_v22 = vcombine.low %v1745_v20, %v1752_v21  ;;  %v2156_v30 = vcombine.high %v1745_v20, %v1752_v21 }
 0x7ec   :  { %v1789_v31 = vcombine.low %v1765_v23, %v1781_v25  ;;  %v1790_v33 = vcombine.high %v1765_v23, %v1781_v25  ;;  %v1805_v34 = vcombine.low %v1772_v24, %v1788_v26  ;;  %v1806_v35 = vcombine.high %v1772_v24, %v1788_v26 }
 0x7ed   :  { %v1832_v36 = vrot.slane %v1825_v27, %v1696_v60  ;;  %v1840_v37 = vrot.slane %v2155_v28, %v1696_v60  ;;  %v1848_v38 = vrot.slane %v1841_v22, %v1696_v60  ;;  %v1856_v39 = vrot.slane %v2156_v30, %v1696_v60 }
 0x7ee   :  { %v1797_v40 = vrot.slane %v1789_v31, %v2921_v4  ;;  %v1804_v41 = vrot.slane %v1790_v33, %v2921_v4  ;;  %v1813_v42 = vrot.slane %v1805_v34, %v2921_v4  ;;  %v1820_v43 = vrot.slane %v1806_v35, %v2921_v4  ;;  %v2159_v31 = vld [vmem:[%s2999_s12] ss:$0 sm:$0xff]  ;;  %s2503_s12 = scalar_lea.vmem %s2112_s16, 256 }
 0x7ef   :  { %v1858_v44 = vcombine.high %v1832_v36, %v1840_v37  ;;  %v1874_v45 = vcombine.high %v1848_v38, %v1856_v39  ;;  %v1857_v46 = vcombine.low %v1832_v36, %v1840_v37  ;;  %v1873_v47 = vcombine.low %v1848_v38, %v1856_v39  ;;  %p2504_p12 = scmp.ne.s32.totalorder %s2112_s16, %s2503_s12  ;;  %p2509_p0 = scmp.lt.s32.totalorder %s2503_s12, %s2503_s12 }
 0x7f0   :  { %v1893_v48 = vcombine.low %v1797_v40, %v1804_v41  ;;  %v2157_v49 = vcombine.high %v1797_v40, %v1804_v41  ;;  %v1909_v50 = vcombine.low %v1813_v42, %v1820_v43  ;;  %v2158_v51 = vcombine.high %v1813_v42, %v1820_v43 }
 0x7f1   :  { %v1872_v52 = vrot.slane %v1858_v44, %v2921_v4  ;;  %v1888_v53 = vrot.slane %v1874_v45, %v2921_v4  ;;  %v1865_v54 = vrot.slane %v1857_v46, %v2921_v4  ;;  %v1881_v55 = vrot.slane %v1873_v47, %v2921_v4  ;;  %p2510_p1 = por %p2509_p0, %p2508_p13 }
 0x7f2   :  { %v1900_v58 = vrot.slane %v1893_v48, %v1696_v60  ;;  %v1908_v59 = vrot.slane %v2157_v49, %v1696_v60  ;;  %v1916_v62 = vrot.slane %v1909_v50, %v1696_v60  ;;  %v1924_v63 = vrot.slane %v2158_v51, %v1696_v60 }
 0x7f3   :  { %v1891_v3 = vcombine.low %v1872_v52, %v1888_v53  ;;  %v1890_v5 = vcombine.high %v1865_v54, %v1881_v55  ;;  %v1889_v6 = vcombine.low %v1865_v54, %v1881_v55  ;;  %v2332_v60 = vpack.c.bf16 %v1993_v0, %v1992_v56  ;;  %p2511_p2 = pnand %p2510_p1, %p2504_p12 }
 0x7f4   :  { %v1925_v7 = vcombine.low %v1900_v58, %v1908_v59  ;;  %v1941_v8 = vcombine.low %v1916_v62, %v1924_v63  ;;  %v1926_v9 = vcombine.high %v1900_v58, %v1908_v59  ;;  %v1942_v10 = vcombine.high %v1916_v62, %v1924_v63 }
 0x7f5   :  { %1971 = vrot.lane.b32.xlu1 %v1891_v3, %s2551_s14  ;;  %1963 = vrot.lane.b32.xlu0 %v1890_v5, %s2536_s21  ;;  %v1892_v14 = vcombine.high %v1872_v52, %v1888_v53 }
 0x7f6   :  { %v1933_v12 = vrot.slane %v1925_v7, %v2921_v4  ;;  %v1949_v13 = vrot.slane %v1941_v8, %v2921_v4  ;;  %2333 = vmatprep.subr.bf16.mxu1 %v2332_v60  ;;  %v1940_v17 = vrot.slane %v1926_v9, %v2921_v4  ;;  %v1956_v18 = vrot.slane %v1942_v10, %v2921_v4 }
 0x7f7   :  { %2335 = vmatpush3.bf16.msra.mxu1 %v2332_v60 }
 0x7f8   :  { %v1958_v15 = vcombine.high %v1933_v12, %v1949_v13  ;;  %v1957_v16 = vcombine.low %v1933_v12, %v1949_v13  ;;  %2337 = vmatprep.subr.bf16.mxu1 %v2336_v11  ;;  %v1959_v19 = vcombine.low %v1940_v17, %v1956_v18  ;;  %v1960_v20 = vcombine.high %v1940_v17, %v1956_v18 }
 0x7f9   :  { %1979 = vrot.lane.b32.xlu0 %v1892_v14, %s2552_s11 }
 0x7fa   :  { %1965 = vrot.lane.b32.xlu1 %v1958_v15, %s2536_s21 }
 0x7fb   :  { %2339 = vmatpush3.bf16.msra.mxu1 %v2336_v11 }
 0x7fd   :  { %2084 = vrot.lane.b32.xlu0 %v2787_v61, %s2541_s4 }
 0x7fe   :  { %1973 = vrot.lane.b32.xlu1 %v1959_v19, %s2551_s14 }
 0x801   :  { %2090 = vrot.lane.b32.xlu0 %v2757_v32, %s2542_s3 }
 0x802   :  { %1981 = vrot.lane.b32.xlu1 %v1960_v20, %s2552_s11 }
 0x806   :  { %2086 = vrot.lane.b32.xlu1 %v2781_v57, %s2541_s4 }
 0x80a   :  { %2092 = vrot.lane.b32.xlu1 %v2755_v29, %s2542_s3 }
 0x867   :  { %v1972_v4 = vpop.permute.xlu1 %1971  ;;  %v1964_v21 = vpop.permute.xlu0 %1963 }
 0x868   :  { %v1985_v23 = vsel %vm676_vm2, %v1889_v6, %v1964_v21 }
 0x869   :  { %v1987_v24 = vsel %vm217_vm1, %v1985_v23, %v1972_v4 }
 0x86b   :  { %v1980_v61 = vpop.permute.xlu0 %1979 }
 0x86c   :  { %v1966_v25 = vpop.permute.xlu1 %1965  ;;  %v1990_v26 = vsel %vm1989_vm5, %v1987_v24, %v1980_v61 }
 0x86d   :  { %2293 = vmatprep.mubr.msk.f32.mxu1 %vm126_vm0, %v1990_v26  ;;  %v1986_v27 = vsel %vm676_vm2, %v1957_v16, %v1966_v25 }
 0x86f   :  { %v2085_v30 = vpop.permute.xlu0 %2084 }
 0x870   :  { %v1974_v32 = vpop.permute.xlu1 %1973 }
 0x871   :  { %v1988_v57 = vsel %vm217_vm1, %v1986_v27, %v1974_v32 }
 0x873   :  { %v2091_v39 = vpop.permute.xlu0 %2090 }
 0x874   :  { %v1982_v28 = vpop.permute.xlu1 %1981 }
 0x875   :  { %v1991_v22 = vsel %vm1989_vm5, %v1988_v57, %v1982_v28 }
 0x876   :  { %2294 = vmatmul.mubr.msk.f32.vlgmr.msra.gmra.mrb[10].mxu1 %vm126_vm0, %v1991_v22 }
 0x878   :  { %v2087_v29 = vpop.permute.xlu1 %2086 }
 0x87c   :  { %v2093_v37 = vpop.permute.xlu1 %2092 }
 0x949   :  { %v2295_v33 = vpop.f32.mrb[10].mxu1 }
 0x94a   :  { %v2081_v34 = vadd.f32 %v2295_v33, %v2159_v31  ;;  %v2075_v35 = vpop.f32.mrb[11].mxu1 }
 0x94b   :  { %v2076_v36 = vadd.f32 %v2159_v31, %v2075_v35 }
 0x94c   :  { %v2097_v38 = vsel %vm126_vm0, %v2081_v34, %v2087_v29 }
 0x94d   :  { %v2096_v40 = vsel %vm126_vm0, %v2076_v36, %v2085_v30  ;;  %v2100_v41 = vsel %vm2098_vm6, %v2097_v38, %v2093_v37 }
 0x94e   :  { %v2099_v42 = vsel %vm2098_vm6, %v2096_v40, %v2091_v39  ;;  %v2103_v43 = vsel %vm2101_vm7, %v2100_v41, 0.0 }
 0x94f   :  { %v2102_v44 = vsel %vm2101_vm7, %v2099_v42, 0.0  ;;  %2105 = vst [vmem:[#allocation11 + $0x8] sm:$0xff] %v2103_v43 }
 0x950   :  { %2104 = vst [vmem:[#allocation11] sm:$0xff] %v2102_v44 }
 0x951   :  { %2514 = shalt.err (!%p2511_p2)
}
 0x952   :  { %s2515_s2 = scalar_lea.hbm %s3000_s13, 256 }
 0x953   :  { %p2516_p3 = scmp.ne.s32.totalorder %s3000_s13, %s2515_s2  ;;  %p2519_p4 = scmp.lt.u32.totalorder %s2515_s2, %s3000_s13 }
 0x955   :  { %p2521_p5 = pnand %p2519_p4, %p2516_p3 }
 0x957   :  { %2524 = shalt.err (!%p2521_p5)
}
 0x958   :  { %2117 = dma.vmem_to_hbm [thread:$0]  %s2112_s16, 256, %s3000_s13, [#allocation4], %s2535_s20, %s2535_s20, %s2536_s21  }
 0x959   :  { %2531 = dma.done.wait [#allocation4], 256  }
 0x95a   :  { %2532 = vsyncadd [#allocation4], 4294967040 }
 0x95b   :  { %2121 = vsyncpa [#allocation3], 1 }
 0x95c   :  { %2122 = vsyncpa [#allocation6], 1 }
 0x95d   :  { %2123 = vsyncpa [#allocation9], 1 }
 0x95e   :  { %2124 = vsyncpa [#allocation4], 1 }

</bundles_post_ra>
